<compile_context>
chip_gen: v7x
topology: tpu7x:2x2x1
jax: 0.10.0
libtpu: 0.0.40
codegen_flags: <defaults>
</compile_context>

<pallas_src>
import functools

import jax
import jax.numpy as jnp
from jax.experimental import pallas as pl
from jax.experimental.pallas import tpu as pltpu


def _round_up(x: int, m: int) -> int:
    return (x + m - 1) // m * m


def _mlp_kernel(x_ref, w1_ref, b1_ref, w2_ref, b2_ref, o_ref):
    # x_ref : (block_rows, fold*C)  each row packs `fold` consecutive points
    # w1_ref: (fold*C, fold*H)      block-diagonal kron(I_fold, W1), compute dtype
    # b1_ref: (1, fold*H)           f32, tiled bias
    # w2_ref: (fold*H, fold)        block-diagonal kron(I_fold, w2), compute dtype
    # b2_ref: (1, 1)                f32 scalar in SMEM
    # o_ref : (block_rows, fold)    packed per-point sigmoid scores, f32
    x = x_ref[...]
    h = jnp.dot(x, w1_ref[...], preferred_element_type=jnp.float32)
    h = jnp.maximum(h + b1_ref[...], 0.0)                        # MinkowskiReLU
    # Second matmul in the compute dtype (bf16 when feats are bf16) with f32
    # accumulation; bias add + sigmoid stay in f32.
    o = jnp.dot(h.astype(w2_ref.dtype), w2_ref[...],
                preferred_element_type=jnp.float32)
    o = o + b2_ref[0, 0]
    o_ref[...] = jax.nn.sigmoid(o).astype(o_ref.dtype)           # MinkowskiSigmoid


@functools.partial(jax.jit, static_argnames=("tile_points", "fold"))
def saliency_regressor(feats, w1, b1, w2, b2, *, tile_points=32768, fold=None):
    """feats: (N, C) sparse-tensor features (f32 or bf16); returns (N, 1) f32."""
    N, C = feats.shape
    H = int(w1.shape[1])
    compute_dtype = feats.dtype          # feed bf16 from the producer to halve HBM reads
    out_dtype = jnp.float32              # scores stay f32 regardless of input dtype
    in_itemsize = jnp.dtype(compute_dtype).itemsize

    if fold is None:
        # Keep hidden activations lane-dense (fold*H >= 128); fold=8 for H>=16
        # (larger fold only multiplies kron-inflated zero FLOPs — v5e guidance).
        fold = max(8, 128 // max(H, 1))

    # --- Ragged N: pad only to a multiple of `fold` (required by the free
    #     row-major pack reshape), never to a multiple of the tile size.  The
    #     ragged last grid block is handled by Pallas' edge clipping.
    rem = N % fold
    n_pad = N + (fold - rem) % fold
    if n_pad != N:
        # TODO(synk): ragged case still pays one pad copy of feats; a pure-JAX
        # tail path would avoid it for huge ragged N.
        feats = jnp.pad(feats, ((0, n_pad - N), (0, 0)))
    rows = n_pad // fold

    # Free row-major reshape: row r packs points [fold*r, fold*r + fold).
    x_packed = feats.reshape(rows, fold * C)

    # Rows per block: multiple of 8 sublanes, clamped to the problem size and
    # to a VMEM budget (double-buffered in/out + f32 hidden scratch) so the
    # default tile also fits v7x's 64 MiB VMEM for larger C.
    block_rows = max(8, min(_round_up(tile_points // fold, 8), _round_up(rows, 8)))
    budget = 40 * 1024 * 1024
    bytes_per_row = fold * (2 * C * in_itemsize + 2 * H * 4 + 2 * 4)
    max_rows = max(8, (budget // bytes_per_row) // 8 * 8)
    block_rows = min(block_rows, max_rows)
    grid = (pl.cdiv(rows, block_rows),)

    # Block-diagonal expanded weights keep packed rows independent.
    eye = jnp.eye(fold, dtype=jnp.float32)
    w1_big = jnp.kron(eye, w1.astype(jnp.float32)).astype(compute_dtype)   # (fold*C, fold*H)
    w2_big = jnp.kron(eye, w2.astype(jnp.float32)).astype(compute_dtype)   # (fold*H, fold)
    b1_big = jnp.tile(b1.astype(jnp.float32), fold).reshape(1, fold * H)
    b2_sc = b2.astype(jnp.float32).reshape(1, 1)

    # Advisory only: logical MLP flops (kron-inflated MXU zeros not counted).
    cost = pl.CostEstimate(
        flops=int(2 * N * C * H + 2 * N * H),
        transcendentals=int(N),
        bytes_accessed=int(N * C * in_itemsize + N * 4
                           + (w1_big.size + w2_big.size) * in_itemsize
                           + b1_big.size * 4),
    )

    # VMEM limit consistent with the chosen tile; floor at the previous 32 MiB,
    # cap below v7x's 64 MiB physical VMEM.
    in_block = block_rows * fold * C * in_itemsize
    out_block = block_rows * fold * 4
    w_bytes = (w1_big.size + w2_big.size) * in_itemsize + b1_big.size * 4
    h_bytes = block_rows * fold * H * 4
    vmem_limit = int(min(48 * 1024 * 1024,
                         max(32 * 1024 * 1024,
                             2 * (in_block + out_block) + 2 * w_bytes + 2 * h_bytes)))

    out_packed = pl.pallas_call(
        _mlp_kernel,
        out_shape=jax.ShapeDtypeStruct((rows, fold), out_dtype),
        grid_spec=pltpu.PrefetchScalarGridSpec(
            num_scalar_prefetch=0,
            grid=grid,
            in_specs=[
                pl.BlockSpec((block_rows, fold * C), lambda i: (i, 0)),  # packed points
                pl.BlockSpec((fold * C, fold * H), lambda i: (0, 0)),    # W1 (resident)
                pl.BlockSpec((1, fold * H), lambda i: (0, 0)),           # b1
                pl.BlockSpec((fold * H, fold), lambda i: (0, 0)),        # W2 (resident)
                pl.BlockSpec(memory_space=pltpu.MemorySpace.SMEM),       # b2 scalar
            ],
            out_specs=pl.BlockSpec((block_rows, fold), lambda i: (i, 0)),
        ),
        compiler_params=pltpu.CompilerParams(
            # Rows are independent -> grid steps may be sharded over v7x's 2 TCs.
            # TODO(synk): if an xprof trace shows a single TC on v7x, switch to
            # pltpu.CORE_PARALLEL (or split rows explicitly via pl.core_map).
            dimension_semantics=("parallel",),
            vmem_limit_bytes=vmem_limit,
        ),
        cost_estimate=cost,
    )(x_packed, w1_big, b1_big, w2_big, b2_sc)

    # (rows, fold) row-major is exactly the per-point order -> free reshape.
    # Rows beyond the valid region in a ragged last block are simply dropped by
    # Pallas (OOB stores); rows are independent — do not add any cross-row
    # reduction to this kernel.
    return out_packed.reshape(n_pad, 1)[:N]


def init_params(key, in_channels, reduction=2):
    """Deterministic synthetic params with nn.Linear-like shapes."""
    hidden = in_channels // reduction
    k1, k2, k3, k4 = jax.random.split(key, 4)
    lim1 = 1.0 / (in_channels ** 0.5)
    lim2 = 1.0 / (hidden ** 0.5)
    w1 = jax.random.uniform(k1, (in_channels, hidden), jnp.float32, -lim1, lim1)
    b1 = jax.random.uniform(k2, (hidden,), jnp.float32, -lim1, lim1)
    w2 = jax.random.uniform(k3, (hidden, 1), jnp.float32, -lim2, lim2)
    b2 = jax.random.uniform(k4, (1,), jnp.float32, -lim2, lim2)
    return w1, b1, w2, b2


if __name__ == "__main__":
    key = jax.random.PRNGKey(0)
    k_feat, k_param = jax.random.split(key)

    N = 256            # number of sparse points (small demo shape)
    in_channels = 32
    reduction = 2

    feats = jax.random.normal(k_feat, (N, in_channels), jnp.float32)
    w1, b1, w2, b2 = init_params(k_param, in_channels, reduction)

    # Pure-JAX reference (same math as the per-point Minkowski MLP forward).
    ref = jax.nn.sigmoid(jnp.maximum(feats @ w1 + b1, 0.0) @ w2 + b2)

    # f32 path — numerically matches the reference tightly.
    out = saliency_regressor(feats, w1, b1, w2, b2)   # tile auto-clamped to small N
    out = jax.block_until_ready(out)
    assert out.shape == (N, 1)
    assert out.dtype == jnp.float32
    assert jnp.allclose(out, ref, atol=1e-4, rtol=1e-4)

    # bf16 producer path (recommended in production: halves the dominant HBM
    # read; matmuls run bf16 with f32 accumulation).  Scores remain f32.
    out_bf = saliency_regressor(feats.astype(jnp.bfloat16), w1, b1, w2, b2)
    out_bf = jax.block_until_ready(out_bf)
    assert out_bf.shape == (N, 1)
    assert out_bf.dtype == jnp.float32
    assert jnp.allclose(out_bf, ref, atol=3e-2, rtol=3e-2)

    print("KERNEL_OK")
</pallas_src>

<mosaic_0001>
module attributes {stable_mosaic.version = 11 : i64} {
  func.func @_mlp_kernel(%arg0: i32, %arg1: memref<32x256xf32, #tpu.memory_space<vmem>>, %arg2: memref<256x128xf32, #tpu.memory_space<vmem>>, %arg3: memref<1x128xf32, #tpu.memory_space<vmem>>, %arg4: memref<128x8xf32, #tpu.memory_space<vmem>>, %arg5: memref<1x1xf32, #tpu.memory_space<smem>>, %arg6: memref<32x8xf32, #tpu.memory_space<vmem>>) attributes {dimension_semantics = [#tpu.dimension_semantics<parallel>], iteration_bounds = array<i64: 1>, scalar_prefetch = 0 : i64, scratch_operands = 0 : i64, tpu.core_type = #tpu.core_type<tc>, window_params = [{transform_indices = @transform_0, window_bounds = array<i64: 32, 256>}, {pipeline_mode = #tpu.pipeline_mode<synchronous>, transform_indices = @transform_1, window_bounds = array<i64: 256, 128>}, {pipeline_mode = #tpu.pipeline_mode<synchronous>, transform_indices = @transform_2, window_bounds = array<i64: 1, 128>}, {pipeline_mode = #tpu.pipeline_mode<synchronous>, transform_indices = @transform_3, window_bounds = array<i64: 128, 8>}, {transform_indices = @transform_4, window_bounds = array<i64: 1, 1>}, {transform_indices = @transform_5, window_bounds = array<i64: 32, 8>}]} {
    %c0 = arith.constant 0 : index
    %c0_0 = arith.constant 0 : index
    %0 = vector.load %arg1[%c0, %c0_0] : memref<32x256xf32, #tpu.memory_space<vmem>>, vector<32x256xf32>
    %c0_1 = arith.constant 0 : index
    %c0_2 = arith.constant 0 : index
    %1 = vector.load %arg2[%c0_1, %c0_2] : memref<256x128xf32, #tpu.memory_space<vmem>>, vector<256x128xf32>
    %cst = arith.constant dense<0.000000e+00> : vector<32x128xf32>
    %2 = tpu.matmul %0, %1, %cst {dimension_numbers = #tpu.dot_dimension_numbers<[1], [0], [0], [1], [0, 0, 1, 1], [], []>} : vector<32x256xf32>, vector<256x128xf32>, vector<32x128xf32> -> vector<32x128xf32>
    %c0_3 = arith.constant 0 : index
    %c0_4 = arith.constant 0 : index
    %3 = vector.load %arg3[%c0_3, %c0_4] : memref<1x128xf32, #tpu.memory_space<vmem>>, vector<1x128xf32>
    %4 = vector.broadcast %3 : vector<1x128xf32> to vector<32x128xf32>
    %5 = arith.addf %2, %4 : vector<32x128xf32>
    %cst_5 = arith.constant 0.000000e+00 : f32
    %6 = vector.broadcast %cst_5 : f32 to vector<32x128xf32>
    %7 = arith.maximumf %5, %6 : vector<32x128xf32>
    %c0_6 = arith.constant 0 : index
    %c0_7 = arith.constant 0 : index
    %8 = vector.load %arg4[%c0_6, %c0_7] : memref<128x8xf32, #tpu.memory_space<vmem>>, vector<128x8xf32>
    %cst_8 = arith.constant dense<0.000000e+00> : vector<32x8xf32>
    %9 = tpu.matmul %7, %8, %cst_8 {dimension_numbers = #tpu.dot_dimension_numbers<[1], [0], [0], [1], [0, 0, 1, 1], [], []>} : vector<32x128xf32>, vector<128x8xf32>, vector<32x8xf32> -> vector<32x8xf32>
    %c0_9 = arith.constant 0 : index
    %c0_10 = arith.constant 0 : index
    %10 = memref.load %arg5[%c0_9, %c0_10] : memref<1x1xf32, #tpu.memory_space<smem>>
    %11 = vector.broadcast %10 : f32 to vector<32x8xf32>
    %12 = arith.addf %9, %11 : vector<32x8xf32>
    %13 = arith.negf %12 : vector<32x8xf32>
    %14 = math.exp %13 : vector<32x8xf32>
    %cst_11 = arith.constant 1.000000e+00 : f32
    %15 = vector.broadcast %cst_11 : f32 to vector<32x8xf32>
    %16 = arith.addf %15, %14 : vector<32x8xf32>
    %17 = arith.divf %15, %16 : vector<32x8xf32>
    %c0_12 = arith.constant 0 : index
    %c0_13 = arith.constant 0 : index
    %18 = vector.load %arg6[%c0_12, %c0_13] : memref<32x8xf32, #tpu.memory_space<vmem>>, vector<32x8xf32>
    tpu.vector_store %arg6[%c0_12, %c0_13], %17 {strides = array<i32>} : memref<32x8xf32, #tpu.memory_space<vmem>>, vector<32x8xf32>,
    return
  }
  func.func @transform_0(%arg0: i32) -> (i32, i32) {
    %c0_i32 = arith.constant 0 : i32
    %c0_i32_0 = arith.constant 0 : i32
    return %arg0, %c0_i32 : i32, i32
  }
  func.func @transform_1(%arg0: i32) -> (i32, i32) {
    %c0_i32 = arith.constant 0 : i32
    %c0_i32_0 = arith.constant 0 : i32
    %c0_i32_1 = arith.constant 0 : i32
    return %c0_i32, %c0_i32_0 : i32, i32
  }
  func.func @transform_2(%arg0: i32) -> (i32, i32) {
    %c0_i32 = arith.constant 0 : i32
    %c0_i32_0 = arith.constant 0 : i32
    %c0_i32_1 = arith.constant 0 : i32
    return %c0_i32, %c0_i32_0 : i32, i32
  }
  func.func @transform_3(%arg0: i32) -> (i32, i32) {
    %c0_i32 = arith.constant 0 : i32
    %c0_i32_0 = arith.constant 0 : i32
    %c0_i32_1 = arith.constant 0 : i32
    return %c0_i32, %c0_i32_0 : i32, i32
  }
  func.func @transform_4(%arg0: i32) -> (i32, i32) {
    %c0_i32 = arith.constant 0 : i32
    %c0_i32_0 = arith.constant 0 : i32
    %c0_i32_1 = arith.constant 0 : i32
    return %c0_i32, %c0_i32_0 : i32, i32
  }
  func.func @transform_5(%arg0: i32) -> (i32, i32) {
    %c0_i32 = arith.constant 0 : i32
    %c0_i32_0 = arith.constant 0 : i32
    return %arg0, %c0_i32 : i32, i32
  }
}

</mosaic_0001>

<bundles_post_ra>
// kernel: tile.9
= control target key start
LH: loop header
LB: loop body
LE: loop exit
PB: predicated region body
PF: predicated region fallthrough
CT: control target
= control target key end

     0   :  { %s67_s10 = smov 112   ;;  %s68_s11 = smov 80   ;;  %vm3_vm0 = vcmask 130048   ;;  %vm9_vm1 = vcmask 1048448   ;;  %vm15_vm2 = vcmask 917248   ;;  %vm21_vm3 = vcmask 786048   ;;  %s111_s0 = inlined_call_operand.vmem [shape: f32[8,16], index: 0, kind: input, shape index: {}]   ;;  %s112_s1 = inlined_call_operand.vmem [shape: f32[1,128], index: 1, kind: output, shape index: {}]  }
   0x1   :  { %v53_v0 = vld [vmem:[%s111_s0 + $0x7] sm:$0x1]   ;;  %v55_v1 = vld [vmem:[%s111_s0 + $0x5] sm:$0x1]   ;;  %v54_v2 = vld [vmem:[%s111_s0 + $0x6] sm:$0x1]  }
   0x2   :  { %7 = vrot.lane.b32.xlu0 %v53_v0, %s67_s10  ;;  %19 = vrot.lane.b32.xlu1 %v55_v1, %s68_s11  ;;  %v56_v3 = vld [vmem:[%s111_s0 + $0x4] sm:$0x1]   ;;  %v2_v4 = vld [vmem:[%s111_s0] sm:$0x1]   ;;  %s69_s18 = smov 96   ;;  %s70_s19 = smov 64  }
   0x3   :  { %4 = vst.msk [vmem:[#allocation0] sm:$0x1] %vm3_vm0, %v2_v4   ;;  %v57_v5 = vld [vmem:[%s111_s0 + $0x3] sm:$0x1]   ;;  %v58_v6 = vld [vmem:[%s111_s0 + $0x2] sm:$0x1]  }
   0x4   :  { %s71_s24 = smov 48   ;;  %s72_s25 = smov 32   ;;  %v59_v7 = vld [vmem:[%s111_s0 + $0x1] sm:$0x1]   ;;  %vm27_vm4 = vcmask 654848   ;;  %vm33_vm5 = vcmask 523648  }
   0x5   :  { %s73_s0 = smov 16   ;;  %vm39_vm6 = vcmask 392448   ;;  %vm45_vm7 = vcmask 261248  }
   0x6   :  { %13 = vrot.lane.b32.xlu0 %v54_v2, %s69_s18  ;;  %25 = vrot.lane.b32.xlu1 %v56_v3, %s70_s19 }
   0xa   :  { %31 = vrot.lane.b32.xlu0 %v57_v5, %s71_s24  ;;  %37 = vrot.lane.b32.xlu1 %v58_v6, %s72_s25 }
   0xe   :  { %43 = vrot.lane.b32.xlu0 %v59_v7, %s73_s0 }
  0x74   :  { %v8_v8 = vpop.permute.xlu0 %7   ;;  %v20_v9 = vpop.permute.xlu1 %19  }
  0x75   :  { %10 = vst.msk [vmem:[#allocation0] sm:$0x1] %vm9_vm1, %v8_v8  }
  0x78   :  { %v14_v10 = vpop.permute.xlu0 %13   ;;  %v26_v11 = vpop.permute.xlu1 %25  }
  0x79   :  { %16 = vst.msk [vmem:[#allocation0] sm:$0x1] %vm15_vm2, %v14_v10  }
  0x7a   :  { %22 = vst.msk [vmem:[#allocation0] sm:$0x1] %vm21_vm3, %v20_v9  }
  0x7b   :  { %28 = vst.msk [vmem:[#allocation0] sm:$0x1] %vm27_vm4, %v26_v11  }
  0x7c   :  { %v32_v12 = vpop.permute.xlu0 %31   ;;  %v38_v13 = vpop.permute.xlu1 %37  }
  0x7d   :  { %34 = vst.msk [vmem:[#allocation0] sm:$0x1] %vm33_vm5, %v32_v12  }
  0x7e   :  { %40 = vst.msk [vmem:[#allocation0] sm:$0x1] %vm39_vm6, %v38_v13  }
  0x80   :  { %v44_v14 = vpop.permute.xlu0 %43  }
  0x81   :  { %46 = vst.msk [vmem:[#allocation0] sm:$0x1] %vm45_vm7, %v44_v14  }
  0x88   :  { %v50_v15 = vld [vmem:[#allocation0] sm:$0x1] }
  0x89   :  { %52 = vst [vmem:[%s112_s1] sm:$0x1] %v50_v15 }

// kernel: saliency_regressor.1
= control target key start
LH: loop header
LB: loop body
LE: loop exit
PB: predicated region body
PF: predicated region fallthrough
CT: control target
= control target key end

     0   :  { %vm284_vm0 = vcmask 64512   ;;  %s696_s1 = inlined_call_operand.vmem [shape: f32[256,128], index: 1, kind: input, shape index: {}]   ;;  %s697_s0 = inlined_call_operand.vmem [shape: f32[32,256], index: 0, kind: input, shape index: {}]   ;;  %s698_s3 = inlined_call_operand.vmem [shape: f32[128,8], index: 3, kind: input, shape index: {}]   ;;  %s699_s2 = inlined_call_operand.vmem [shape: f32[1,128], index: 2, kind: input, shape index: {}]   ;;  %s700_s4 = inlined_call_operand.<no memory space> [shape: f32[1,1], index: 4, kind: input, shape index: {}]   ;;  %s701_s5 = inlined_call_operand.vmem [shape: f32[32,8], index: 5, kind: output, shape index: {}]  }
   0x1   :  { %v45_v0 = vld [vmem:[%s696_s1 + $0x80] sm:$0xff]  ;;  %v46_v1 = vld [vmem:[%s696_s1 + $0x88] sm:$0xff]  ;;  %v47_v5 = vld [vmem:[%s696_s1 + $0x90] sm:$0xff] }
   0x2   :  { %v29_v2 = vld [vmem:[%s696_s1] sm:$0xff]  ;;  %v400_v3 = vpack.c.bf16 %v46_v1, %v45_v0  ;;  %v30_v4 = vld [vmem:[%s696_s1 + $0x8] sm:$0xff]  ;;  %v48_v6 = vld [vmem:[%s696_s1 + $0x98] sm:$0xff] }
   0x3   :  { %v402_v7 = vpack.c.bf16 %v30_v4, %v29_v2  ;;  %v404_v8 = vpack.c.bf16 %v48_v6, %v47_v5  ;;  %v31_v9 = vld [vmem:[%s696_s1 + $0x10] sm:$0xff]  ;;  %v32_v10 = vld [vmem:[%s696_s1 + $0x18] sm:$0xff]  ;;  %v49_v11 = vld [vmem:[%s696_s1 + $0xa0] sm:$0xff] }
   0x4   :  { %401 = vmatprep.subr.bf16.mxu0 %v400_v3  ;;  %v50_v12 = vld [vmem:[%s696_s1 + $0xa8] sm:$0xff]  ;;  %v406_v13 = vpack.c.bf16 %v32_v10, %v31_v9  ;;  %v33_v15 = vld [vmem:[%s696_s1 + $0x20] sm:$0xff]  ;;  %v51_v17 = vld [vmem:[%s696_s1 + $0xb0] sm:$0xff] }
   0x5   :  { %403 = vmatpush3.bf16.msra.mxu0 %v402_v7  ;;  %v408_v14 = vpack.c.bf16 %v50_v12, %v49_v11  ;;  %v34_v16 = vld [vmem:[%s696_s1 + $0x28] sm:$0xff]  ;;  %v52_v18 = vld [vmem:[%s696_s1 + $0xb8] sm:$0xff]  ;;  %v35_v21 = vld [vmem:[%s696_s1 + $0x30] sm:$0xff] }
   0x6   :  { %405 = vmatprep.subr.bf16.mxu0 %v404_v8  ;;  %v410_v19 = vpack.c.bf16 %v34_v16, %v33_v15  ;;  %v412_v20 = vpack.c.bf16 %v52_v18, %v51_v17  ;;  %v36_v22 = vld [vmem:[%s696_s1 + $0x38] sm:$0xff]  ;;  %v53_v23 = vld [vmem:[%s696_s1 + $0xc0] sm:$0xff]  ;;  %v54_v24 = vld [vmem:[%s696_s1 + $0xc8] sm:$0xff] }
   0x7   :  { %v22_v25 = vld [vmem:[%s697_s0 + $0x8] sm:$0xff]  ;;  %v414_v26 = vpack.c.bf16 %v36_v22, %v35_v21  ;;  %v37_v27 = vld [vmem:[%s696_s1 + $0x40] sm:$0xff]  ;;  %v416_v29 = vpack.c.bf16 %v54_v24, %v53_v23  ;;  %v55_v30 = vld [vmem:[%s696_s1 + $0xd0] sm:$0xff] }
   0x8   :  { %132 = vmatprep.mubr.f32.mxu0 %v22_v25  ;;  %v38_v28 = vld [vmem:[%s696_s1 + $0x48] sm:$0xff]  ;;  %v157_v31 = vld [vmem:[%s698_s3] sm:$0xff]  ;;  %v56_v33 = vld [vmem:[%s696_s1 + $0xd8] sm:$0xff] }
   0x9   :  { %407 = vmatpush3.bf16.msra.mxu0 %v406_v13  ;;  %v158_v32 = vld [vmem:[%s698_s3 + $0x8] sm:$0xff]  ;;  %v159_v35 = vld [vmem:[%s698_s3 + $0x10] sm:$0xff]  ;;  %v160_v36 = vld [vmem:[%s698_s3 + $0x18] sm:$0xff]  ;;  %v418_v40 = vpack.c.bf16 %v38_v28, %v37_v27  ;;  %v420_v41 = vpack.c.bf16 %v56_v33, %v55_v30 }
   0xa   :  { %409 = vmatprep.subr.bf16.mxu0 %v408_v14  ;;  %v432_v34 = vpack.c.bf16 %v158_v32, %v157_v31  ;;  %v436_v37 = vpack.c.bf16 %v160_v36, %v159_v35  ;;  %v161_v38 = vld [vmem:[%s698_s3 + $0x20] sm:$0xff]  ;;  %v162_v39 = vld [vmem:[%s698_s3 + $0x28] sm:$0xff]  ;;  %v39_v42 = vld [vmem:[%s696_s1 + $0x50] sm:$0xff] }
   0xb   :  { %v40_v43 = vld [vmem:[%s696_s1 + $0x58] sm:$0xff]  ;;  %v57_v44 = vld [vmem:[%s696_s1 + $0xe0] sm:$0xff]  ;;  %v58_v45 = vld [vmem:[%s696_s1 + $0xe8] sm:$0xff]  ;;  %v440_v46 = vpack.c.bf16 %v162_v39, %v161_v38 }
   0xc   :  { %433 = vmatprep.subr.bf16.mxu1 %v432_v34  ;;  %v163_v47 = vld [vmem:[%s698_s3 + $0x30] sm:$0xff]  ;;  %v164_v48 = vld [vmem:[%s698_s3 + $0x38] sm:$0xff]  ;;  %v422_v49 = vpack.c.bf16 %v40_v43, %v39_v42  ;;  %v424_v50 = vpack.c.bf16 %v58_v45, %v57_v44  ;;  %v41_v51 = vld [vmem:[%s696_s1 + $0x60] sm:$0xff] }
   0xd   :  { %411 = vmatpush3.bf16.msra.mxu0 %v410_v19  ;;  %435 = vmatpush3.bf16.msra.mxu1 %v432_v34  ;;  %v42_v52 = vld [vmem:[%s696_s1 + $0x68] sm:$0xff]  ;;  %v59_v53 = vld [vmem:[%s696_s1 + $0xf0] sm:$0xff]  ;;  %v60_v54 = vld [vmem:[%s696_s1 + $0xf8] sm:$0xff]  ;;  %v444_v55 = vpack.c.bf16 %v164_v48, %v163_v47 }
   0xe   :  { %413 = vmatprep.subr.bf16.mxu0 %v412_v20  ;;  %437 = vmatprep.subr.bf16.mxu1 %v436_v37  ;;  %v165_v56 = vld [vmem:[%s698_s3 + $0x40] sm:$0xff]  ;;  %v166_v57 = vld [vmem:[%s698_s3 + $0x48] sm:$0xff]  ;;  %v426_v58 = vpack.c.bf16 %v42_v52, %v41_v51  ;;  %v428_v59 = vpack.c.bf16 %v60_v54, %v59_v53  ;;  %v43_v60 = vld [vmem:[%s696_s1 + $0x70] sm:$0xff] }
   0xf   :  { %v44_v61 = vld [vmem:[%s696_s1 + $0x78] sm:$0xff]  ;;  %v448_v62 = vpack.c.bf16 %v166_v57, %v165_v56  ;;  %v21_v0 = vld [vmem:[%s697_s0] sm:$0xff]  ;;  %v23_v2 = vld [vmem:[%s697_s0 + $0x10] sm:$0xff] }
  0x10   :  { %v430_v63 = vpack.c.bf16 %v44_v61, %v43_v60  ;;  %v24_v1 = vld [vmem:[%s697_s0 + $0x18] sm:$0xff]  ;;  %v26_v3 = vld [vmem:[%s697_s0 + $0x28] sm:$0xff]  ;;  %v25_v4 = vld [vmem:[%s697_s0 + $0x20] sm:$0xff] }
  0x11   :  { %415 = vmatpush3.bf16.msra.mxu0 %v414_v26  ;;  %439 = vmatpush3.bf16.msra.mxu1 %v436_v37  ;;  %v28_v5 = vld [vmem:[%s697_s0 + $0x38] sm:$0xff]  ;;  %v27_v6 = vld [vmem:[%s697_s0 + $0x30] sm:$0xff]  ;;  %v169_v10 = vld [vmem:[%s698_s3 + $0x60] sm:$0xff]  ;;  %v174_v37 = vstv %s700_s4 }
  0x12   :  { %417 = vmatprep.subr.bf16.mxu0 %v416_v29  ;;  %441 = vmatprep.subr.bf16.mxu1 %v440_v46  ;;  %v167_v7 = vld [vmem:[%s698_s3 + $0x50] sm:$0xff]  ;;  %v168_v8 = vld [vmem:[%s698_s3 + $0x58] sm:$0xff]  ;;  %v170_v11 = vld [vmem:[%s698_s3 + $0x68] sm:$0xff] }
  0x13   :  { %v452_v9 = vpack.c.bf16 %v168_v8, %v167_v7  ;;  %v456_v12 = vpack.c.bf16 %v170_v11, %v169_v10  ;;  %v171_v13 = vld [vmem:[%s698_s3 + $0x70] sm:$0xff]  ;;  %v172_v14 = vld [vmem:[%s698_s3 + $0x78] sm:$0xff]  ;;  %v293_v18 = vld [vmem:[%s699_s2] ss:$0 sm:$0xff] }
  0x14   :  { %v460_v15 = vpack.c.bf16 %v172_v14, %v171_v13 }
  0x15   :  { %419 = vmatpush3.bf16.msra.mxu0 %v418_v40  ;;  %443 = vmatpush3.bf16.msra.mxu1 %v440_v46 }
  0x16   :  { %421 = vmatprep.subr.bf16.mxu0 %v420_v41  ;;  %445 = vmatprep.subr.bf16.mxu1 %v444_v55 }
  0x19   :  { %423 = vmatpush3.bf16.msra.mxu0 %v422_v49  ;;  %447 = vmatpush3.bf16.msra.mxu1 %v444_v55 }
  0x1a   :  { %425 = vmatprep.subr.bf16.mxu0 %v424_v50  ;;  %449 = vmatprep.subr.bf16.mxu1 %v448_v62 }
  0x1d   :  { %427 = vmatpush3.bf16.msra.mxu0 %v426_v58  ;;  %451 = vmatpush3.bf16.msra.mxu1 %v448_v62 }
  0x1e   :  { %429 = vmatprep.subr.bf16.mxu0 %v428_v59  ;;  %453 = vmatprep.subr.bf16.mxu1 %v452_v9 }
  0x21   :  { %431 = vmatpush3.bf16.msra.mxu0 %v430_v63  ;;  %455 = vmatpush3.bf16.msra.mxu1 %v452_v9 }
  0x22   :  { %457 = vmatprep.subr.bf16.mxu1 %v456_v12 }
  0x24   :  { %133 = vmatmul.mubr.f32.vlgmr.msra.gmra.mrb[0].mxu0 %v21_v0 }
  0x25   :  { %137 = vmatprep.mubr.f32.mxu0 %v24_v1  ;;  %459 = vmatpush3.bf16.msra.mxu1 %v456_v12 }
  0x26   :  { %461 = vmatprep.subr.bf16.mxu1 %v460_v15 }
  0x28   :  { %138 = vmatmul.mubr.f32.gmra.mrb[2].mxu0 %v23_v2 }
  0x29   :  { %142 = vmatprep.mubr.f32.mxu0 %v26_v3  ;;  %463 = vmatpush3.bf16.msra.mxu1 %v460_v15 }
  0x2c   :  { %143 = vmatmul.mubr.f32.gmra.mrb[4].mxu0 %v25_v4 }
  0x2d   :  { %147 = vmatprep.mubr.f32.mxu0 %v28_v5 }
  0x30   :  { %148 = vmatmul.mubr.f32.gmra.mrb[6].mxu0 %v27_v6 }
  0xf7   :  { %v330_v16 = vpop.f32.mrb[0].mxu0 }
  0xf8   :  { %v331_v17 = vpop.f32.mrb[1].mxu0 }
  0xf9   :  { %v332_v19 = vadd.f32 %v331_v17, %v330_v16 }
  0xfb   :  { %v333_v20 = vpop.f32.mrb[2].mxu0  ;;  %v135_v21 = vadd.f32 %v332_v19, %v293_v18 }
  0xfc   :  { %v334_v22 = vpop.f32.mrb[3].mxu0 }
  0xfd   :  { %v335_v23 = vadd.f32 %v334_v22, %v333_v20  ;;  %v153_v24 = vmax.f32 %v135_v21, 0.0 }
  0xff   :  { %v140_v25 = vadd.f32 %v335_v23, %v293_v18  ;;  %v336_v26 = vpop.f32.mrb[4].mxu0  ;;  %394 = vmatprep.mubr.f32.mxu1 %v153_v24 }
 0x100   :  { %v337_v27 = vpop.f32.mrb[5].mxu0 }
 0x101   :  { %v154_v28 = vmax.f32 %v140_v25, 0.0  ;;  %v338_v29 = vadd.f32 %v337_v27, %v336_v26 }
 0x103   :  { %v145_v30 = vadd.f32 %v338_v29, %v293_v18  ;;  %v339_v31 = vpop.f32.mrb[6].mxu0  ;;  %395 = vmatmul.mubr.f32.vlgmr.msra.gmra.mrb[0].mxu1 %v154_v28 }
 0x104   :  { %v340_v32 = vpop.f32.mrb[7].mxu0 }
 0x105   :  { %v155_v33 = vmax.f32 %v145_v30, 0.0  ;;  %v341_v34 = vadd.f32 %v340_v32, %v339_v31 }
 0x107   :  { %v150_v35 = vadd.f32 %v341_v34, %v293_v18  ;;  %397 = vmatprep.mubr.f32.mxu1 %v155_v33 }
 0x109   :  { %v156_v36 = vmax.f32 %v150_v35, 0.0 }
 0x10b   :  { %398 = vmatmul.mubr.f32.gmra.mrb[2].mxu1 %v156_v36 }
 0x1d6   :  { %v396_v38 = vpop.f32.mrb[0].mxu1 }
 0x1d7   :  { %v247_v39 = vadd.f32 %v396_v38, %v174_v37  ;;  %v241_v40 = vpop.f32.mrb[1].mxu1 }
 0x1d8   :  { %v242_v41 = vadd.f32 %v241_v40, %v174_v37 }
 0x1d9   :  { %v295_v42 = vmul.f32 -1.442695, %v247_v39 }
 0x1da   :  { %v294_v43 = vmul.f32 -1.442695, %v242_v41 }
 0x1db   :  { %464 = vpow2.f32 %v295_v42 }
 0x1dc   :  { %466 = vpow2.f32 %v294_v43 }
 0x1de   :  { %v399_v44 = vpop.f32.mrb[2].mxu1 }
 0x1df   :  { %v257_v45 = vadd.f32 %v399_v44, %v174_v37  ;;  %v251_v46 = vpop.f32.mrb[3].mxu1 }
 0x1e0   :  { %v252_v47 = vadd.f32 %v251_v46, %v174_v37 }
 0x1e1   :  { %v297_v48 = vmul.f32 -1.442695, %v257_v45 }
 0x1e2   :  { %v296_v49 = vmul.f32 -1.442695, %v252_v47 }
 0x1e3   :  { %468 = vpow2.f32 %v297_v48 }
 0x1e4   :  { %470 = vpow2.f32 %v296_v49 }
 0x1e5   :  { %v465_v50 = vpop.eup %464 }
 0x1e6   :  { %v467_v51 = vpop.eup %466  ;;  %v273_v52 = vadd.f32 1.0, %v465_v50 }
 0x1e7   :  { %v272_v53 = vadd.f32 1.0, %v467_v51 }
 0x1e8   :  { %472 = vrcp.f32 %v273_v52 }
 0x1e9   :  { %474 = vrcp.f32 %v272_v53 }
 0x1ed   :  { %v469_v54 = vpop.eup %468 }
 0x1ee   :  { %v471_v55 = vpop.eup %470  ;;  %v275_v56 = vadd.f32 1.0, %v469_v54 }
 0x1ef   :  { %v274_v57 = vadd.f32 1.0, %v471_v55 }
 0x1f0   :  { %476 = vrcp.f32 %v275_v56 }
 0x1f1   :  { %478 = vrcp.f32 %v274_v57 }
 0x1f2   :  { %v473_v58 = vpop.eup %472 }
 0x1f3   :  { %v475_v59 = vpop.eup %474  ;;  %286 = vst.msk [vmem:[%s701_s5 + $0x8] sm:$0xff] %vm284_vm0, %v473_v58 }
 0x1f4   :  { %285 = vst.msk [vmem:[%s701_s5] sm:$0xff] %vm284_vm0, %v475_v59 }
 0x1fa   :  { %v477_v60 = vpop.eup %476 }
 0x1fb   :  { %v479_v61 = vpop.eup %478  ;;  %288 = vst.msk [vmem:[%s701_s5 + $0x18] sm:$0xff] %vm284_vm0, %v477_v60 }
 0x1fc   :  { %287 = vst.msk [vmem:[%s701_s5 + $0x10] sm:$0xff] %vm284_vm0, %v479_v61 }

</bundles_post_ra>
